<compile_context>
chip_gen: v6e
topology: v6e:2x2x1
jax: 0.10.0
libtpu: 0.0.40
codegen_flags: <defaults>
</compile_context>

<pallas_src>
import functools

import jax
import jax.numpy as jnp
from jax import lax
from jax.experimental import pallas as pl
from jax.experimental.pallas import tpu as pltpu


def _bottleneck_kernel(x_ref, s1_ref, b1_ref, w1_ref, b2_ref, w2_ref, o_ref,
                       *, width, hw):
    """Whole BottleneckBlock for B_TILE images packed along the lane axis.

      x_ref:  (Cin, L)          f32   L = B_TILE * HW (images consecutive)
      s1/b1:  (Cin, 1)          f32   folded BN1 scale / shift
      w1_ref: (Cinter, Cin)     bf16  1x1 conv weight with BN2 scale folded in
      b2_ref: (Cinter, 1)       f32   folded BN2 shift
      w2_ref: (Cout, 9*Cinter)  bf16  3x3 conv weight, tap-major im2col layout
      o_ref:  (Cin+Cout, L)     f32   concat([x, conv_out]) along channels
    """
    L = x_ref.shape[1]
    cout, kc = w2_ref.shape
    cinter = kc // 9
    w = width
    pad = w + 1                      # covers the largest tap shift |dy*W + dx|

    x = x_ref[...]                                                # (Cin, L) f32

    # --- BN1 (inference, folded) + ReLU : f32 on the VPU ---------------------
    a1 = jnp.maximum(x * s1_ref[...] + b1_ref[...], 0.0)

    # --- conv1 (1x1) with BN2 scale pre-folded into w1, then +shift, ReLU ----
    h = jnp.dot(w1_ref[...], a1.astype(jnp.bfloat16),
                preferred_element_type=jnp.float32)               # (Cinter, L)
    a2 = jnp.maximum(h + b2_ref[...], 0.0)                        # (Cinter, L)

    # Column-index machinery (computed once, hoisted out of the tap loop).
    col = lax.broadcasted_iota(jnp.int32, (1, L), 1)
    x_in_row = col % w               # x coordinate within an image row
    pos_in_img = col % hw            # flattened position within an image

    # Source-column pre-masked copies for the dx = -/+1 taps: a legitimate
    # dx=-1 read never touches a source column with x==W-1 (and vice versa),
    # so zeroing those source columns implements the horizontal pad=1 exactly.
    a2_m = jnp.where(x_in_row == w - 1, 0.0, a2)   # feeds dx = -1 taps
    a2_p = jnp.where(x_in_row == 0, 0.0, a2)       # feeds dx = +1 taps

    # Output-column masks for dy taps: in the packed (Cin, B*HW) layout a
    # vertical tap at an image's first/last row would read the neighboring
    # image, so those output rows are zeroed (also covers the outer pad).
    valid_dym1 = pos_in_img >= w             # dy = -1 invalid on first row
    valid_dyp1 = pos_in_img < hw - w         # dy = +1 invalid on last row

    # Zero-pad the lane axis once per dx-variant; every tap is a static slice.
    zpad = jnp.zeros((cinter, pad), jnp.float32)
    base = {
        -1: jnp.concatenate([zpad, a2_m, zpad], axis=1),
        0:  jnp.concatenate([zpad, a2,   zpad], axis=1),
        1:  jnp.concatenate([zpad, a2_p, zpad], axis=1),
    }

    # --- conv2 (3x3, pad=1): build the (9*Cinter, L) im2col stack and do a
    #     single deep-K MXU matmul against the tap-major weight --------------
    patches = []
    for dy in (-1, 0, 1):
        for dx in (-1, 0, 1):
            shift = dy * w + dx
            p = base[dx][:, pad + shift: pad + shift + L]         # (Cinter, L)
            if dy == -1:
                p = jnp.where(valid_dym1, p, 0.0)
            elif dy == 1:
                p = jnp.where(valid_dyp1, p, 0.0)
            patches.append(p)
    im2col = jnp.concatenate(patches, axis=0).astype(jnp.bfloat16)  # (9*Cinter, L)

    out = jnp.dot(w2_ref[...], im2col,
                  preferred_element_type=jnp.float32)             # (Cout, L)

    # --- dense connectivity: concat([x, out]) as two direct lane-dense stores
    cin = x.shape[0]
    o_ref[:cin, :] = x
    o_ref[cin:, :] = out.astype(o_ref.dtype)


def _fold_bn(gamma, beta, mean, var, eps):
    scale = gamma * lax.rsqrt(var + eps)
    return scale, beta - mean * scale


def prepare_params(params, eps=1e-5):
    """One-time weight-side prep (outside the per-call hot path)."""
    (g1, b1, m1, v1, w1, g2, b2, m2, v2, w2) = params
    cinter, cin = w1.shape
    cout = w2.shape[0]

    s1, sh1 = _fold_bn(g1, b1, m1, v1, eps)
    s2, sh2 = _fold_bn(g2, b2, m2, v2, eps)

    # Fold the BN2 scale into the (bias-free, linear) 1x1 conv weight.
    w1_folded = (s2[:, None] * w1).astype(jnp.bfloat16)           # (Cinter, Cin)

    # (Cout, Cinter, 3, 3) OIHW -> (Cout, ky, kx, Cinter) -> (Cout, 9*Cinter),
    # tap-major to match the in-kernel im2col stacking order.
    w2_col = jnp.transpose(w2, (0, 2, 3, 1)).reshape(cout, 9 * cinter)
    w2_col = w2_col.astype(jnp.bfloat16)

    return dict(
        s1=s1.reshape(cin, 1).astype(jnp.float32),
        b1=sh1.reshape(cin, 1).astype(jnp.float32),
        w1=w1_folded,
        b2=sh2.reshape(cinter, 1).astype(jnp.float32),
        w2=w2_col,
    )


def bottleneck_block(x_nchw, prep, *, num_steps=None):
    """x_nchw: (N, Cin, H, W) f32.  Returns (N, Cin + Cout, H, W) f32."""
    # TODO(synk): dropout omitted (dropRate=0.0 -> no-op); BN uses running
    # statistics (inference mode), not training-mode batch statistics.
    n, cin, hgt, wid = x_nchw.shape
    hw = hgt * wid
    cinter = prep["w1"].shape[0]
    cout = prep["w2"].shape[0]
    ctot = cin + cout

    # Default: 2 grid steps when possible so both v7x TensorCores get work;
    # on v5e/v6e (single TC) pass num_steps=1 to fold everything into one step.
    if num_steps is None:
        num_steps = 2 if (n >= 2 and n % 2 == 0) else 1
    assert n % num_steps == 0, "batch must divide evenly into grid steps"
    b_tile = n // num_steps
    L = b_tile * hw

    # NCHW -> (Cin, N*HW): channels on sublanes, all images packed along lanes
    # (one XLA transpose; keeps every in-kernel op / store lane-dense).
    x_cl = jnp.transpose(x_nchw.reshape(n, cin, hw), (1, 0, 2)).reshape(cin, n * hw)

    kernel = functools.partial(_bottleneck_kernel, width=wid, hw=hw)
    y = pl.pallas_call(
        kernel,
        out_shape=jax.ShapeDtypeStruct((ctot, n * hw), jnp.float32),
        grid_spec=pltpu.PrefetchScalarGridSpec(
            num_scalar_prefetch=0,
            grid=(num_steps,),
            in_specs=[
                pl.BlockSpec((cin, L), lambda i: (0, i)),
                pl.BlockSpec((cin, 1), lambda i: (0, 0)),
                pl.BlockSpec((cin, 1), lambda i: (0, 0)),
                pl.BlockSpec((cinter, cin), lambda i: (0, 0)),
                pl.BlockSpec((cinter, 1), lambda i: (0, 0)),
                pl.BlockSpec((cout, 9 * cinter), lambda i: (0, 0)),
            ],
            out_specs=pl.BlockSpec((ctot, L), lambda i: (0, i)),
        ),
        compiler_params=pltpu.CompilerParams(
            dimension_semantics=("parallel",)),
    )(x_cl, prep["s1"], prep["b1"], prep["w1"], prep["b2"], prep["w2"])

    # (Ctot, N*HW) -> NCHW.
    return jnp.transpose(y.reshape(ctot, n, hw), (1, 0, 2)).reshape(n, ctot, hgt, wid)


def init_bottleneck_params(key, in_planes, out_planes):
    inter_planes = out_planes * 4
    ks = jax.random.split(key, 10)
    g1 = 1.0 + 0.1 * jax.random.normal(ks[0], (in_planes,), jnp.float32)
    b1 = 0.1 * jax.random.normal(ks[1], (in_planes,), jnp.float32)
    m1 = 0.1 * jax.random.normal(ks[2], (in_planes,), jnp.float32)
    v1 = 1.0 + 0.1 * jax.random.uniform(ks[3], (in_planes,), jnp.float32)
    w1 = jax.random.normal(ks[4], (inter_planes, in_planes), jnp.float32) * \
        jnp.sqrt(2.0 / (1 * 1 * inter_planes))                    # kaiming-style
    g2 = 1.0 + 0.1 * jax.random.normal(ks[5], (inter_planes,), jnp.float32)
    b2 = 0.1 * jax.random.normal(ks[6], (inter_planes,), jnp.float32)
    m2 = 0.1 * jax.random.normal(ks[7], (inter_planes,), jnp.float32)
    v2 = 1.0 + 0.1 * jax.random.uniform(ks[8], (inter_planes,), jnp.float32)
    w2 = jax.random.normal(ks[9], (out_planes, inter_planes, 3, 3), jnp.float32) * \
        jnp.sqrt(2.0 / (3 * 3 * out_planes))
    return (g1, b1, m1, v1, w1, g2, b2, m2, v2, w2)


def ref_bottleneck(x, params, eps=1e-5):
    """Pure-JAX NCHW reference mirroring the PyTorch forward (f32)."""
    (g1, b1, m1, v1, w1, g2, b2, m2, v2, w2) = params
    s1, sh1 = _fold_bn(g1, b1, m1, v1, eps)
    a1 = jnp.maximum(x * s1[None, :, None, None] + sh1[None, :, None, None], 0.0)
    h = lax.conv_general_dilated(
        a1, w1[:, :, None, None], (1, 1), "VALID",
        dimension_numbers=("NCHW", "OIHW", "NCHW"),
        precision=lax.Precision.HIGHEST)
    s2, sh2 = _fold_bn(g2, b2, m2, v2, eps)
    a2 = jnp.maximum(h * s2[None, :, None, None] + sh2[None, :, None, None], 0.0)
    out = lax.conv_general_dilated(
        a2, w2, (1, 1), ((1, 1), (1, 1)),
        dimension_numbers=("NCHW", "OIHW", "NCHW"),
        precision=lax.Precision.HIGHEST)
    return jnp.concatenate([x, out], axis=1)


if __name__ == "__main__":
    key = jax.random.PRNGKey(0)
    kx, kp = jax.random.split(key)

    N, C, H, W = 2, 4, 16, 16        # NCHW, same layout as the PyTorch module
    out_planes = 8                   # inter_planes = 4 * out_planes = 32

    x = jax.random.normal(kx, (N, C, H, W), jnp.float32)
    params = init_bottleneck_params(kp, C, out_planes)
    prep = prepare_params(params)    # one-time BN folding / bf16 / im2col prep

    run = jax.jit(bottleneck_block)
    y = jax.block_until_ready(run(x, prep))

    assert y.shape == (N, C + out_planes, H, W)
    y_ref = ref_bottleneck(x, params)
    err = float(jnp.max(jnp.abs(y - y_ref)))
    # bf16 MXU inputs (f32 accumulation) -> small rounding diff vs f32 reference.
    assert err < 5e-2, f"max abs err {err}"

    print("KERNEL_OK")
</pallas_src>

<mosaic_0001>
module attributes {stable_mosaic.version = 11 : i64} {
  func.func @_bottleneck_kernel(%arg0: i32, %arg1: memref<4x256xf32, #tpu.memory_space<vmem>>, %arg2: memref<4x1xf32, #tpu.memory_space<vmem>>, %arg3: memref<4x1xf32, #tpu.memory_space<vmem>>, %arg4: memref<32x4xbf16, #tpu.memory_space<vmem>>, %arg5: memref<32x1xf32, #tpu.memory_space<vmem>>, %arg6: memref<8x288xbf16, #tpu.memory_space<vmem>>, %arg7: memref<12x256xf32, #tpu.memory_space<vmem>>) attributes {dimension_semantics = [#tpu.dimension_semantics<parallel>], iteration_bounds = array<i64: 2>, scalar_prefetch = 0 : i64, scratch_operands = 0 : i64, tpu.core_type = #tpu.core_type<tc>, window_params = [{transform_indices = @transform_0, window_bounds = array<i64: 4, 256>}, {pipeline_mode = #tpu.pipeline_mode<synchronous>, transform_indices = @transform_1, window_bounds = array<i64: 4, 1>}, {pipeline_mode = #tpu.pipeline_mode<synchronous>, transform_indices = @transform_2, window_bounds = array<i64: 4, 1>}, {pipeline_mode = #tpu.pipeline_mode<synchronous>, transform_indices = @transform_3, window_bounds = array<i64: 32, 4>}, {pipeline_mode = #tpu.pipeline_mode<synchronous>, transform_indices = @transform_4, window_bounds = array<i64: 32, 1>}, {pipeline_mode = #tpu.pipeline_mode<synchronous>, transform_indices = @transform_5, window_bounds = array<i64: 8, 288>}, {transform_indices = @transform_6, window_bounds = array<i64: 12, 256>}]} {
    %c0 = arith.constant 0 : index
    %c0_0 = arith.constant 0 : index
    %0 = vector.load %arg1[%c0, %c0_0] : memref<4x256xf32, #tpu.memory_space<vmem>>, vector<4x256xf32>
    %c0_1 = arith.constant 0 : index
    %c0_2 = arith.constant 0 : index
    %1 = vector.load %arg2[%c0_1, %c0_2] : memref<4x1xf32, #tpu.memory_space<vmem>>, vector<4x1xf32>
    %2 = vector.broadcast %1 : vector<4x1xf32> to vector<4x256xf32>
    %3 = arith.mulf %0, %2 : vector<4x256xf32>
    %c0_3 = arith.constant 0 : index
    %c0_4 = arith.constant 0 : index
    %4 = vector.load %arg3[%c0_3, %c0_4] : memref<4x1xf32, #tpu.memory_space<vmem>>, vector<4x1xf32>
    %5 = vector.broadcast %4 : vector<4x1xf32> to vector<4x256xf32>
    %6 = arith.addf %3, %5 : vector<4x256xf32>
    %cst = arith.constant 0.000000e+00 : f32
    %7 = vector.broadcast %cst : f32 to vector<4x256xf32>
    %8 = arith.maximumf %6, %7 : vector<4x256xf32>
    %c0_5 = arith.constant 0 : index
    %c0_6 = arith.constant 0 : index
    %9 = vector.load %arg4[%c0_5, %c0_6] : memref<32x4xbf16, #tpu.memory_space<vmem>>, vector<32x4xbf16>
    %10 = arith.truncf %8 : vector<4x256xf32> to vector<4x256xbf16>
    %cst_7 = arith.constant dense<0.000000e+00> : vector<32x256xf32>
    %11 = tpu.matmul %9, %10, %cst_7 {dimension_numbers = #tpu.dot_dimension_numbers<[1], [0], [0], [1], [0, 0, 1, 1], [], []>} : vector<32x4xbf16>, vector<4x256xbf16>, vector<32x256xf32> -> vector<32x256xf32>
    %c0_8 = arith.constant 0 : index
    %c0_9 = arith.constant 0 : index
    %12 = vector.load %arg5[%c0_8, %c0_9] : memref<32x1xf32, #tpu.memory_space<vmem>>, vector<32x1xf32>
    %13 = vector.broadcast %12 : vector<32x1xf32> to vector<32x256xf32>
    %14 = arith.addf %11, %13 : vector<32x256xf32>
    %cst_10 = arith.constant 0.000000e+00 : f32
    %15 = vector.broadcast %cst_10 : f32 to vector<32x256xf32>
    %16 = arith.maximumf %14, %15 : vector<32x256xf32>
    %17 = tpu.iota {dimensions = array<i32: 1>} : vector<1x256xi32>
    %c16_i32 = arith.constant 16 : i32
    %c0_i32 = arith.constant 0 : i32
    %18 = arith.cmpi eq, %c16_i32, %c0_i32 : i32
    %c1_i32 = arith.constant 1 : i32
    %19 = arith.select %18, %c1_i32, %c16_i32 : i32
    %20 = vector.broadcast %19 : i32 to vector<1x256xi32>
    %21 = arith.remsi %17, %20 : vector<1x256xi32>
    %c0_i32_11 = arith.constant 0 : i32
    %22 = vector.broadcast %c0_i32_11 : i32 to vector<1x256xi32>
    %23 = arith.cmpi ne, %21, %22 : vector<1x256xi32>
    %c0_i32_12 = arith.constant 0 : i32
    %24 = vector.broadcast %c0_i32_12 : i32 to vector<1x256xi32>
    %25 = arith.cmpi slt, %21, %24 : vector<1x256xi32>
    %c0_i32_13 = arith.constant 0 : i32
    %26 = arith.cmpi slt, %19, %c0_i32_13 : i32
    %27 = vector.broadcast %26 : i1 to vector<1x256xi1>
    %28 = vector.broadcast %27 : vector<1x256xi1> to vector<1x256xi1>
    %29 = arith.xori %25, %28 : vector<1x256xi1>
    %30 = arith.andi %29, %23 : vector<1x256xi1>
    %31 = vector.broadcast %19 : i32 to vector<1x256xi32>
    %32 = arith.addi %21, %31 : vector<1x256xi32>
    %33 = arith.select %30, %32, %21 : vector<1x256xi1>, vector<1x256xi32>
    %c256_i32 = arith.constant 256 : i32
    %c0_i32_14 = arith.constant 0 : i32
    %34 = arith.cmpi eq, %c256_i32, %c0_i32_14 : i32
    %c1_i32_15 = arith.constant 1 : i32
    %35 = arith.select %34, %c1_i32_15, %c256_i32 : i32
    %36 = vector.broadcast %35 : i32 to vector<1x256xi32>
    %37 = arith.remsi %17, %36 : vector<1x256xi32>
    %c0_i32_16 = arith.constant 0 : i32
    %38 = vector.broadcast %c0_i32_16 : i32 to vector<1x256xi32>
    %39 = arith.cmpi ne, %37, %38 : vector<1x256xi32>
    %c0_i32_17 = arith.constant 0 : i32
    %40 = vector.broadcast %c0_i32_17 : i32 to vector<1x256xi32>
    %41 = arith.cmpi slt, %37, %40 : vector<1x256xi32>
    %c0_i32_18 = arith.constant 0 : i32
    %42 = arith.cmpi slt, %35, %c0_i32_18 : i32
    %43 = vector.broadcast %42 : i1 to vector<1x256xi1>
    %44 = vector.broadcast %43 : vector<1x256xi1> to vector<1x256xi1>
    %45 = arith.xori %41, %44 : vector<1x256xi1>
    %46 = arith.andi %45, %39 : vector<1x256xi1>
    %47 = vector.broadcast %35 : i32 to vector<1x256xi32>
    %48 = arith.addi %37, %47 : vector<1x256xi32>
    %49 = arith.select %46, %48, %37 : vector<1x256xi1>, vector<1x256xi32>
    %c15_i32 = arith.constant 15 : i32
    %50 = vector.broadcast %c15_i32 : i32 to vector<1x256xi32>
    %51 = arith.cmpi eq, %33, %50 : vector<1x256xi32>
    %cst_19 = arith.constant 0.000000e+00 : f32
    %52 = vector.shape_cast %51 : vector<1x256xi1> to vector<1x256xi1>
    %53 = vector.broadcast %52 : vector<1x256xi1> to vector<32x256xi1>
    %54 = vector.broadcast %cst_19 : f32 to vector<32x256xf32>
    %55 = arith.select %53, %54, %16 : vector<32x256xi1>, vector<32x256xf32>
    %c0_i32_20 = arith.constant 0 : i32
    %56 = vector.broadcast %c0_i32_20 : i32 to vector<1x256xi32>
    %57 = arith.cmpi eq, %33, %56 : vector<1x256xi32>
    %cst_21 = arith.constant 0.000000e+00 : f32
    %58 = vector.shape_cast %57 : vector<1x256xi1> to vector<1x256xi1>
    %59 = vector.broadcast %58 : vector<1x256xi1> to vector<32x256xi1>
    %60 = vector.broadcast %cst_21 : f32 to vector<32x256xf32>
    %61 = arith.select %59, %60, %16 : vector<32x256xi1>, vector<32x256xf32>
    %c16_i32_22 = arith.constant 16 : i32
    %62 = vector.broadcast %c16_i32_22 : i32 to vector<1x256xi32>
    %63 = arith.cmpi sge, %49, %62 : vector<1x256xi32>
    %c240_i32 = arith.constant 240 : i32
    %64 = vector.broadcast %c240_i32 : i32 to vector<1x256xi32>
    %65 = arith.cmpi slt, %49, %64 : vector<1x256xi32>
    %cst_23 = arith.constant 0.000000e+00 : f32
    %66 = vector.broadcast %cst_23 : f32 to vector<32x17xf32>
    %67 = tpu.concatenate %66, %55, %66 in 1 : vector<32x17xf32>, vector<32x256xf32>, vector<32x17xf32> -> vector<32x290xf32>
    %68 = tpu.concatenate %66, %16, %66 in 1 : vector<32x17xf32>, vector<32x256xf32>, vector<32x17xf32> -> vector<32x290xf32>
    %69 = tpu.concatenate %66, %61, %66 in 1 : vector<32x17xf32>, vector<32x256xf32>, vector<32x17xf32> -> vector<32x290xf32>
    %70 = vector.extract_strided_slice %67 {offsets = [0, 0], sizes = [32, 256], strides = [1, 1]} : vector<32x290xf32> to vector<32x256xf32>
    %cst_24 = arith.constant 0.000000e+00 : f32
    %71 = vector.shape_cast %63 : vector<1x256xi1> to vector<1x256xi1>
    %72 = vector.broadcast %71 : vector<1x256xi1> to vector<32x256xi1>
    %73 = vector.broadcast %cst_24 : f32 to vector<32x256xf32>
    %74 = arith.select %72, %70, %73 : vector<32x256xi1>, vector<32x256xf32>
    %75 = vector.extract_strided_slice %68 {offsets = [0, 1], sizes = [32, 256], strides = [1, 1]} : vector<32x290xf32> to vector<32x256xf32>
    %cst_25 = arith.constant 0.000000e+00 : f32
    %76 = vector.shape_cast %63 : vector<1x256xi1> to vector<1x256xi1>
    %77 = vector.broadcast %76 : vector<1x256xi1> to vector<32x256xi1>
    %78 = vector.broadcast %cst_25 : f32 to vector<32x256xf32>
    %79 = arith.select %77, %75, %78 : vector<32x256xi1>, vector<32x256xf32>
    %80 = vector.extract_strided_slice %69 {offsets = [0, 2], sizes = [32, 256], strides = [1, 1]} : vector<32x290xf32> to vector<32x256xf32>
    %cst_26 = arith.constant 0.000000e+00 : f32
    %81 = vector.shape_cast %63 : vector<1x256xi1> to vector<1x256xi1>
    %82 = vector.broadcast %81 : vector<1x256xi1> to vector<32x256xi1>
    %83 = vector.broadcast %cst_26 : f32 to vector<32x256xf32>
    %84 = arith.select %82, %80, %83 : vector<32x256xi1>, vector<32x256xf32>
    %85 = vector.extract_strided_slice %67 {offsets = [0, 16], sizes = [32, 256], strides = [1, 1]} : vector<32x290xf32> to vector<32x256xf32>
    %86 = vector.extract_strided_slice %68 {offsets = [0, 17], sizes = [32, 256], strides = [1, 1]} : vector<32x290xf32> to vector<32x256xf32>
    %87 = vector.extract_strided_slice %69 {offsets = [0, 18], sizes = [32, 256], strides = [1, 1]} : vector<32x290xf32> to vector<32x256xf32>
    %88 = vector.extract_strided_slice %67 {offsets = [0, 32], sizes = [32, 256], strides = [1, 1]} : vector<32x290xf32> to vector<32x256xf32>
    %cst_27 = arith.constant 0.000000e+00 : f32
    %89 = vector.shape_cast %65 : vector<1x256xi1> to vector<1x256xi1>
    %90 = vector.broadcast %89 : vector<1x256xi1> to vector<32x256xi1>
    %91 = vector.broadcast %cst_27 : f32 to vector<32x256xf32>
    %92 = arith.select %90, %88, %91 : vector<32x256xi1>, vector<32x256xf32>
    %93 = vector.extract_strided_slice %68 {offsets = [0, 33], sizes = [32, 256], strides = [1, 1]} : vector<32x290xf32> to vector<32x256xf32>
    %cst_28 = arith.constant 0.000000e+00 : f32
    %94 = vector.shape_cast %65 : vector<1x256xi1> to vector<1x256xi1>
    %95 = vector.broadcast %94 : vector<1x256xi1> to vector<32x256xi1>
    %96 = vector.broadcast %cst_28 : f32 to vector<32x256xf32>
    %97 = arith.select %95, %93, %96 : vector<32x256xi1>, vector<32x256xf32>
    %98 = vector.extract_strided_slice %69 {offsets = [0, 34], sizes = [32, 256], strides = [1, 1]} : vector<32x290xf32> to vector<32x256xf32>
    %cst_29 = arith.constant 0.000000e+00 : f32
    %99 = vector.shape_cast %65 : vector<1x256xi1> to vector<1x256xi1>
    %100 = vector.broadcast %99 : vector<1x256xi1> to vector<32x256xi1>
    %101 = vector.broadcast %cst_29 : f32 to vector<32x256xf32>
    %102 = arith.select %100, %98, %101 : vector<32x256xi1>, vector<32x256xf32>
    %103 = tpu.concatenate %74, %79, %84, %85, %86, %87, %92, %97, %102 in 0 : vector<32x256xf32>, vector<32x256xf32>, vector<32x256xf32>, vector<32x256xf32>, vector<32x256xf32>, vector<32x256xf32>, vector<32x256xf32>, vector<32x256xf32>, vector<32x256xf32> -> vector<288x256xf32>
    %104 = arith.truncf %103 : vector<288x256xf32> to vector<288x256xbf16>
    %c0_30 = arith.constant 0 : index
    %c0_31 = arith.constant 0 : index
    %105 = vector.load %arg6[%c0_30, %c0_31] : memref<8x288xbf16, #tpu.memory_space<vmem>>, vector<8x288xbf16>
    %cst_32 = arith.constant dense<0.000000e+00> : vector<8x256xf32>
    %106 = tpu.matmul %105, %104, %cst_32 {dimension_numbers = #tpu.dot_dimension_numbers<[1], [0], [0], [1], [0, 0, 1, 1], [], []>} : vector<8x288xbf16>, vector<288x256xbf16>, vector<8x256xf32> -> vector<8x256xf32>
    %c0_33 = arith.constant 0 : index
    %c0_34 = arith.constant 0 : index
    %107 = vector.load %arg7[%c0_33, %c0_34] : memref<12x256xf32, #tpu.memory_space<vmem>>, vector<4x256xf32>
    tpu.vector_store %arg7[%c0_33, %c0_34], %0 {strides = array<i32>} : memref<12x256xf32, #tpu.memory_space<vmem>>, vector<4x256xf32>,
    %c4 = arith.constant 4 : index
    %c0_35 = arith.constant 0 : index
    %108 = vector.load %arg7[%c4, %c0_35] : memref<12x256xf32, #tpu.memory_space<vmem>>, vector<8x256xf32>
    tpu.vector_store %arg7[%c4, %c0_35], %106 {strides = array<i32>} : memref<12x256xf32, #tpu.memory_space<vmem>>, vector<8x256xf32>,
    return
  }
  func.func @transform_0(%arg0: i32) -> (i32, i32) {
    %c0_i32 = arith.constant 0 : i32
    %c0_i32_0 = arith.constant 0 : i32
    return %c0_i32, %arg0 : i32, i32
  }
  func.func @transform_1(%arg0: i32) -> (i32, i32) {
    %c0_i32 = arith.constant 0 : i32
    %c0_i32_0 = arith.constant 0 : i32
    %c0_i32_1 = arith.constant 0 : i32
    return %c0_i32, %c0_i32_0 : i32, i32
  }
  func.func @transform_2(%arg0: i32) -> (i32, i32) {
    %c0_i32 = arith.constant 0 : i32
    %c0_i32_0 = arith.constant 0 : i32
    %c0_i32_1 = arith.constant 0 : i32
    return %c0_i32, %c0_i32_0 : i32, i32
  }
  func.func @transform_3(%arg0: i32) -> (i32, i32) {
    %c0_i32 = arith.constant 0 : i32
    %c0_i32_0 = arith.constant 0 : i32
    %c0_i32_1 = arith.constant 0 : i32
    return %c0_i32, %c0_i32_0 : i32, i32
  }
  func.func @transform_4(%arg0: i32) -> (i32, i32) {
    %c0_i32 = arith.constant 0 : i32
    %c0_i32_0 = arith.constant 0 : i32
    %c0_i32_1 = arith.constant 0 : i32
    return %c0_i32, %c0_i32_0 : i32, i32
  }
  func.func @transform_5(%arg0: i32) -> (i32, i32) {
    %c0_i32 = arith.constant 0 : i32
    %c0_i32_0 = arith.constant 0 : i32
    %c0_i32_1 = arith.constant 0 : i32
    return %c0_i32, %c0_i32_0 : i32, i32
  }
  func.func @transform_6(%arg0: i32) -> (i32, i32) {
    %c0_i32 = arith.constant 0 : i32
    %c0_i32_0 = arith.constant 0 : i32
    return %c0_i32, %arg0 : i32, i32
  }
}

</mosaic_0001>

<bundles_post_ra>
// kernel: bottleneck_block.1
= control target key start
LH: loop header
LB: loop body
LE: loop exit
PB: predicated region body
PF: predicated region fallthrough
CT: control target
= control target key end

     0   :  { %s1730_s21 = smov 0   ;;  %s1732_s22 = smov 0   ;;  %s2293_s0 = inlined_call_operand.vmem [shape: f32[4,512], index: 0, kind: input, shape index: {}]   ;;  %s2294_s1 = inlined_call_operand.vmem [shape: f32[4,1], index: 1, kind: input, shape index: {}]   ;;  %s2295_s2 = inlined_call_operand.vmem [shape: f32[4,1], index: 2, kind: input, shape index: {}]   ;;  %s2296_s3 = inlined_call_operand.vmem [shape: bf16[32,4], index: 3, kind: input, shape index: {}]   ;;  %s2297_s4 = inlined_call_operand.vmem [shape: f32[32,1], index: 4, kind: input, shape index: {}]   ;;  %s2298_s5 = inlined_call_operand.vmem [shape: bf16[8,288], index: 5, kind: input, shape index: {}]   ;;  %s2299_s6 = inlined_call_operand.vmem [shape: f32[12,512], index: 6, kind: output, shape index: {}]  }
   0x1   :  { %s1734_s23 = smov 0  }
   0x2 LB: > { %s1741_s24 = sadd.s32 4294967295, %s1682_s23   ;;  %s1743_s25 = sadd.s32 1, %s1682_s23   ;;  %s1682_s23 = sphi %s1734_s23, %s2317_s23   ;;  %s1678_s22 = sphi %s1732_s22, %s2316_s22   ;;  %s1674_s21 = sphi %s1730_s21, %s2315_s21  }
   0x3   : > { %s151_s26 = ssub.s32 %s1682_s23, %s1743_s25  ;;  %s154_s27 = sadd.s32 1, %s1678_s22 }
   0x4   : > { %p152_p0 = scmp.eq.s32.totalorder %s151_s26, 0  ;;  %p164_p1 = scmp.ne.s32.totalorder %s1678_s22, %s1674_s21 }
   0x5   : > { %p165_p2 = scmp.eq.s32.totalorder %s1741_s24, 1  ;;  %p1262_p3 = scmp.ge.s32.totalorder %s1682_s23, 1 }
   0x6   : > { %s1750_s28 = scalar_select %p152_p0, %s1678_s22, %s154_s27  }
   0x7   : > { %p1752_p4 = por %p165_p2, %p164_p1  ;;  %p213_p5 = scmp.lt.s32.totalorder %s1682_s23, 3 }
   0x9   : > { %p214_p6 = pnand %p1262_p3, %p213_p5 }
   0xa   : > { %s1264_s8 = sshll.u32 (!%p214_p6), %s1741_s24, 1  ;;  %s239_s9 = sand.u32 (!%p214_p6), 1, %s1674_s21  }
   0xb   : > { %217 = sbr.rel (%p214_p6) target bundleno = 937 (0x3a9), region = 44  ;;  %p243_p7 = scmp.lt.s32.totalorder (!%p214_p6), %s1264_s8, 3 }
   0xc   : > { %s1263_s12 = sshll.u32 (!%p214_p6), %s239_s9, 5  ;;  %s1686_s11 = smov (!%p214_p6), 17  }
   0xd   : > { %s1769_s19 = scalar_lea.vmem (!%p214_p6), [#allocation2], %s1263_s12  ;;  %s1687_s12 = smov (!%p214_p6), 127  }
   0xe   : > { %s1689_s14 = smov (!%p214_p6), 126   ;;  %s1690_s15 = smov (!%p214_p6), 95  }
   0xf   : > { %s1691_s16 = smov (!%p214_p6), 96   ;;  %s1692_s17 = smov (!%p214_p6), 110  }
  0x10   : > { %v251_v0 = vld [vmem:[%s2294_s1] sm:$0xf]  ;;  %v1684_v1 = vmov 0   ;;  %s2319_s8 = smov (!%p243_p7, %s1264_s8), 3  ;;  %v291_v6 = vld [vmem:[%s2297_s4 + $0x10] sm:$0xff]  ;;  %v292_v7 = vld [vmem:[%s2297_s4 + $0x18] sm:$0xff]  ;;  %v259_v11 = vlaneseq }
  0x11   : > { %1352 = vset.pattern.permute.xlu0 %v1684_v1  ;;  %369 = vmatprep.mubr.bf16.mxu0 %v1684_v1  ;;  %v265_v2 = vld [vmem:[%s2295_s2] sm:$0xf]  ;;  %s1265_s13 = sshll.u32 %s2319_s8, 2  ;;  %v290_v8 = vld [vmem:[%s2297_s4 + $0x8] sm:$0xff]  ;;  %v1685_v9 = vmov 839922192  }
  0x12   : > { %254 = vperm.xlu0 %1352, %v251_v0   ;;  %1353 = vset.pattern.permute.xlu1 %v1684_v1  ;;  %v289_v3 = vld [vmem:[%s2297_s4] sm:$0xff]  ;;  %s246_s18 = scalar_lea.vmem %s2293_s0, %s1265_s13  ;;  %v257_v10 = vunpack.c.l.s4 %v1685_v9  ;;  %v260_v13 = vshrl.u32 %v259_v11, 7  ;;  %vm330_vm0 = vcmask 1041408   ;;  %vm323_vm1 = vcmask 31744   ;;  %v1656_v27 = vld [vmem:[%s2296_s3 + $0x8] sm:$0xff]   ;;  %s1688_s13 = smov 112  }
  0x13   : > { %v250_v4 = vld [vmem:[%s246_s18] sm:$0xff]  ;;  %305 = vperm.xlu1 %1353, %v291_v6   ;;  %v1788_v30 = vand.u32 127, %v259_v11  ;;  %vm505_vm6 = vcmask 138240   ;;  %s1693_s18 = smov 111   ;;  %s1694_s20 = smov 94   ;;  %vm927_vm7 = vcmask 916480  }
  0x14   : > { %v1161_v5 = vcombine.high %v250_v4, %v250_v4  ;;  %1163 = vst [vmem:[%s1769_s19] sm:$0xf] %v250_v4  ;;  %v258_v12 = vunpack.c.0.s8 %v257_v10  ;;  %v1655_v26 = vld [vmem:[%s2296_s3] sm:$0xff]   ;;  %vm719_vm8 = vcmask 1031168   ;;  %vm662_vm10 = vcmask 1039360   ;;  %s1316_s30 = sshll.u32 (%p1752_p4), %s1741_s24, 4 }
  0x15   : > { %v1791_v35 = vadd.s32 128, %v1788_v30  ;;  %v405_v42 = vand.u32 15, %v1788_v30  ;;  %vm829_vm12 = vcmask 777216   ;;  %vm780_vm15 = vcmask 785408   ;;  %s1184_s9 = scalar_lea.vmem (%p1752_p4), %s2299_s6, %s1316_s30 }
  0x16   : > { %268 = vperm.xlu0 %1352, %v265_v2   ;;  %1164 = vst [vmem:[%s1769_s19 + $0x8] sm:$0xf] %v1161_v5  ;;  %v261_v14 = vsub.s32 %v258_v12, %v260_v13 }
  0x17   : > { %310 = vperm.xlu1 %1353, %v292_v7   ;;  %v412_v43 = vand.u32 15, %v1791_v35  ;;  %vm1795_vm2 = vcmp.eq.s32.totalorder %v405_v42, 15  ;;  %vm1826_vm5 = vcmp.eq.s32.totalorder %v405_v42, 0 }
  0x19   : > { %vm1799_vm3 = vcmp.eq.s32.totalorder %v412_v43, 15  ;;  %vm1816_vm4 = vcmp.eq.s32.totalorder %v412_v43, 0 }
  0x1a   : > { %295 = vperm.xlu0 %1352, %v289_v3  }
  0x1b   : > { %300 = vperm.xlu1 %1353, %v290_v8  }
  0x8d   : > { %v255_v15 = vpop.permute.xlu0 %254 }
  0x8e   : > { %v262_v16 = vrot.slane %v255_v15, %v261_v14  ;;  %v306_v28 = vpop.permute.xlu1 %305 }
  0x90   : > { %v264_v18 = vmul.f32 %v262_v16, %v250_v4 }
  0x91   : > { %v269_v17 = vpop.permute.xlu0 %268 }
  0x92   : > { %v276_v19 = vrot.slane %v269_v17, %v261_v14  ;;  %v311_v33 = vpop.permute.xlu1 %310 }
  0x94   : > { %v278_v20 = vadd.f32 %v276_v19, %v264_v18 }
  0x95   : > { %v296_v36 = vpop.permute.xlu0 %295 }
  0x96   : > { %v279_v21 = vmax.f32 %v278_v20, 0.0  ;;  %v301_v44 = vpop.permute.xlu1 %300 }
  0x98   : > { %v285_v22 = vcombine.high %v279_v21, %v279_v21  ;;  %v287_v23 = vpack.c.bf16 %v279_v21, %v279_v21 }
  0x9a   : > { %v288_v24 = vpack.c.bf16 %v285_v22, %v285_v22  ;;  %v332_v25 = vsel %vm330_vm0, %v287_v23, 0 }
  0x9c   : > { %1268 = vmatprep.subr.msk.bf16.mxu0 %vm330_vm0, %v288_v24  ;;  %vm1009_vm0 = vcmask 900096  }
  0x9d   : > { %352 = vmatpush1.bf16.msra.mxu0 %v332_v25 }
  0xa0   : > { %1269 = vmatmul.mubr.msk.bf16.vlgmr.msra.gmra.mxu0 %vm323_vm1, %v1655_v26 }
  0xa1   : > { %379 = vmatprep.mubr.bf16.mxu0 %v1684_v1 }
  0xa8   : > { %1270 = vmatmul.mubr.msk.bf16.gmra.mxu0 %vm323_vm1, %v1656_v27  ;;  %vm878_vm1 = vcmask 769024  }
  0xa9   : > { %1151 = vmatprep.mubr.bf16.mxu0 %v1684_v1 }
 0x160   : > { %v371_v29 = vpop.f32.mrf.mxu0 }
 0x161   : > { %v372_v40 = vadd.f32 %v371_v29, %v296_v36 }
 0x162   : > { %v373_v31 = vpop.f32.mrf.mxu0 }
 0x163   : > { %v374_v38 = vadd.f32 %v373_v31, %v296_v36  ;;  %v390_v52 = vmax.f32 %v372_v40, 0.0 }
 0x164   : > { %v375_v32 = vpop.f32.mrf.mxu0 }
 0x165   : > { %v391_v48 = vmax.f32 %v374_v38, 0.0  ;;  %v376_v53 = vadd.f32 %v375_v32, %v301_v44  ;;  %v455_v4 = vsel %vm1795_vm2, 0.0, %v390_v52  ;;  %v469_v18 = vsel %vm1826_vm5, 0.0, %v390_v52 }
 0x166   : > { %v377_v34 = vpop.f32.mrf.mxu0 }
 0x167   : > { %v378_v49 = vadd.f32 %v377_v34, %v301_v44  ;;  %v456_v0 = vsel %vm1799_vm3, 0.0, %v391_v48  ;;  %v392_v1 = vmax.f32 %v376_v53, 0.0  ;;  %v470_v16 = vsel %vm1816_vm4, 0.0, %v391_v48 }
 0x168   : > { %v381_v37 = vpop.f32.mrf.mxu0  ;;  %v1359_v6 = vpack.i.bf16 %v456_v0, %v455_v4  ;;  %v1379_v20 = vpack.i.bf16 %v470_v16, %v469_v18  ;;  %v1404_v26 = vpack.i.bf16 %v391_v48, %v390_v52 }
 0x169   : > { %v382_v39 = vadd.f32 %v381_v37, %v306_v28  ;;  %v393_v62 = vmax.f32 %v378_v49, 0.0  ;;  %v457_v11 = vsel %vm1795_vm2, 0.0, %v392_v1  ;;  %v471_v22 = vsel %vm1826_vm5, 0.0, %v392_v1 }
 0x16a   : > { %v383_v41 = vpop.f32.mrf.mxu0 }
 0x16b   : > { %v394_v45 = vmax.f32 %v382_v39, 0.0  ;;  %v384_v46 = vadd.f32 %v383_v41, %v306_v28  ;;  %v458_v8 = vsel %vm1799_vm3, 0.0, %v393_v62  ;;  %v472_v21 = vsel %vm1816_vm4, 0.0, %v393_v62 }
 0x16c   : > { %v385_v47 = vpop.f32.mrf.mxu0  ;;  %v1369_v13 = vpack.i.bf16 %v458_v8, %v457_v11  ;;  %v1389_v23 = vpack.i.bf16 %v472_v21, %v471_v22  ;;  %v1409_v27 = vpack.i.bf16 %v393_v62, %v392_v1 }
 0x16d   : > { %v395_v50 = vmax.f32 %v384_v46, 0.0  ;;  %v386_v51 = vadd.f32 %v385_v47, %v311_v33  ;;  %v459_v59 = vsel %vm1795_vm2, 0.0, %v394_v45  ;;  %v473_v12 = vsel %vm1826_vm5, 0.0, %v394_v45 }
 0x16e   : > { %v387_v54 = vpop.f32.mrf.mxu0 }
 0x16f   : > { %v396_v57 = vmax.f32 %v386_v51, 0.0  ;;  %v388_v58 = vadd.f32 %v387_v54, %v311_v33  ;;  %v460_v60 = vsel %vm1799_vm3, 0.0, %v395_v50  ;;  %v474_v9 = vsel %vm1816_vm4, 0.0, %v395_v50 }
 0x170   : > { %v1354_v61 = vpack.i.bf16 %v460_v60, %v459_v59  ;;  %v1374_v14 = vpack.i.bf16 %v474_v9, %v473_v12  ;;  %v1394_v24 = vpack.i.bf16 %v395_v50, %v394_v45 }
 0x171   : > { %v397_v63 = vmax.f32 %v388_v58, 0.0  ;;  %v461_v2 = vsel %vm1795_vm2, 0.0, %v396_v57  ;;  %v475_v17 = vsel %vm1826_vm5, 0.0, %v396_v57  ;;  %vm968_vm2 = vcmask 908288  }
 0x172   : > { %1355 = vrot.lane.b32.xlu0 %v1354_v61, %s1686_s11 }
 0x173   : > { %v462_v3 = vsel %vm1799_vm3, 0.0, %v397_v63  ;;  %v476_v15 = vsel %vm1816_vm4, 0.0, %v397_v63  ;;  %v1399_v25 = vpack.i.bf16 %v397_v63, %v396_v57  ;;  %vm1074_vm3 = vcmask 261120  }
 0x174   : > { %v1364_v5 = vpack.i.bf16 %v462_v3, %v461_v2  ;;  %v1384_v19 = vpack.i.bf16 %v476_v15, %v475_v17 }
 0x176   : > { %1365 = vrot.lane.b32.xlu1 %v1364_v5, %s1686_s11  ;;  %1360 = vrot.lane.b32.xlu0 %v1359_v6, %s1686_s11 }
 0x17a   : > { %1370 = vrot.lane.b32.xlu1 %v1369_v13, %s1686_s11  ;;  %1375 = vrot.lane.b32.xlu0 %v1374_v14, %s1686_s11 }
 0x17e   : > { %1385 = vrot.lane.b32.xlu1 %v1384_v19, %s1686_s11  ;;  %1380 = vrot.lane.b32.xlu0 %v1379_v20, %s1686_s11 }
 0x182   : > { %1390 = vrot.lane.b32.xlu1 %v1389_v23, %s1686_s11  ;;  %1395 = vrot.lane.b32.xlu0 %v1394_v24, %s1686_s11 }
 0x186   : > { %1400 = vrot.lane.b32.xlu1 %v1399_v25, %s1686_s11  ;;  %1405 = vrot.lane.b32.xlu0 %v1404_v26, %s1686_s11 }
 0x18a   : > { %1410 = vrot.lane.b32.xlu1 %v1409_v27, %s1686_s11 }
 0x1e4   : > { %v1855_v28 = vpop.permute.xlu0 %1355 }
 0x1e5   : > { %v1357_v29 = vunpack.i.l.bf16 %v1855_v28  ;;  %v1358_v59 = vunpack.i.h.bf16 %v1855_v28 }
 0x1e7   : > { %v1864_v34 = vsel %vm505_vm6, 0.0, %v1357_v29  ;;  %v1942_v27 = vsel %vm505_vm6, %v1357_v29, %v1358_v59 }
 0x1e8   : > { %v1858_v31 = vpop.permute.xlu1 %1365  ;;  %v1361_v32 = vpop.permute.xlu0 %1360 }
 0x1e9   : > { %v1367_v33 = vunpack.i.l.bf16 %v1858_v31  ;;  %v1362_v37 = vunpack.i.l.bf16 %v1361_v32  ;;  %v1368_v49 = vunpack.i.h.bf16 %v1858_v31  ;;  %v1363_v50 = vunpack.i.h.bf16 %v1361_v32 }
 0x1eb   : > { %v1867_v36 = vsel %vm505_vm6, 0.0, %v1367_v33  ;;  %v1874_v42 = vsel %vm505_vm6, 0.0, %v1362_v37  ;;  %v526_v63 = vsel %vm505_vm6, %v1363_v50, 0.0  ;;  %v1895_v2 = vsel %vm505_vm6, %v1362_v37, %v1363_v50 }
 0x1ec   : > { %v1287_v38 = vpack.c.bf16 %v1867_v36, %v1864_v34  ;;  %v1371_v39 = vpop.permute.xlu1 %1370  ;;  %v1871_v40 = vpop.permute.xlu0 %1375  ;;  %v1900_v3 = vsel %vm505_vm6, %v1367_v33, %v1368_v49  ;;  %v1921_v19 = vpack.i.bf16 %v526_v63, %v1895_v2 }
 0x1ed   : > { %v1372_v41 = vunpack.i.l.bf16 %v1371_v39  ;;  %v1373_v4 = vunpack.i.h.bf16 %v1371_v39  ;;  %v1029_v39 = vpack.c.bf16 %v1900_v3, %v1942_v27  ;;  %v1378_v50 = vunpack.i.h.bf16 %v1871_v40 }
 0x1ef   : > { %v1877_v43 = vsel %vm505_vm6, 0.0, %v1372_v41  ;;  %v527_v20 = vsel %vm505_vm6, %v1373_v4, 0.0  ;;  %v1925_v21 = vsel %vm505_vm6, %v1372_v41, %v1373_v4 }
 0x1f0   : > { %v1290_v44 = vpack.c.bf16 %v1877_v43, %v1874_v42  ;;  %v1881_v45 = vpop.permute.xlu1 %1385  ;;  %v1381_v46 = vpop.permute.xlu0 %1380  ;;  %v1449_v37 = vpack.i.bf16 %v527_v20, %v1925_v21  ;;  %v1027_v41 = vpack.c.bf16 %v1925_v21, %v1895_v2  ;;  %v1434_v28 = vpack.i.bf16 %v1877_v43, %v1874_v42 }
 0x1f1   : > { %v1383_v60 = vunpack.i.h.bf16 %v1381_v46  ;;  %v1382_v61 = vunpack.i.l.bf16 %v1381_v46  ;;  %v1387_v63 = vunpack.i.l.bf16 %v1881_v45 }
 0x1f3   : > { %v614_v12 = vsel %vm505_vm6, %v1383_v60, 0.0  ;;  %v598_v15 = vsel %vm505_vm6, %v1382_v61, %v1383_v60  ;;  %v610_v24 = vsel %vm505_vm6, 0.0, %v1382_v61  ;;  %v613_v4 = vsel %vm505_vm6, 0.0, %v1387_v63 }
 0x1f4   : > { %v1391_v47 = vpop.permute.xlu1 %1390  ;;  %v1883_v48 = vpop.permute.xlu0 %1395  ;;  %v1935_v26 = vpack.i.bf16 %v614_v12, %v598_v15 }
 0x1f5   : > { %v1393_v55 = vunpack.i.h.bf16 %v1391_v47  ;;  %v1392_v56 = vunpack.i.l.bf16 %v1391_v47  ;;  %v1398_v57 = vunpack.i.h.bf16 %v1883_v48  ;;  %v1397_v58 = vunpack.i.l.bf16 %v1883_v48 }
 0x1f6   : > { %v528_v47 = vsel %vm505_vm6, %v1358_v59, 0.0 }
 0x1f7   : > { %v615_v8 = vsel %vm505_vm6, %v1393_v55, 0.0  ;;  %v572_v9 = vsel %vm505_vm6, %v1398_v57, 0.0  ;;  %v599_v10 = vsel %vm505_vm6, %v1392_v56, %v1393_v55  ;;  %v556_v11 = vsel %vm505_vm6, %v1397_v58, %v1398_v57 }
 0x1f8   : > { %v1886_v51 = vpop.permute.xlu1 %1400  ;;  %v1406_v52 = vpop.permute.xlu0 %1405  ;;  %v611_v16 = vsel %vm505_vm6, 0.0, %v1392_v56  ;;  %v1927_v22 = vpack.i.bf16 %v572_v9, %v556_v11  ;;  %v1929_v23 = vpack.i.bf16 %v615_v8, %v599_v10  ;;  %v616_v55 = vsel %vm505_vm6, %v1378_v50, 0.0 }
 0x1f9   : > { %v1408_v53 = vunpack.i.h.bf16 %v1406_v52  ;;  %v1407_v54 = vunpack.i.l.bf16 %v1406_v52  ;;  %v1946_v33 = vpack.i.bf16 %v611_v16, %v610_v24  ;;  %v1403_v29 = vunpack.i.h.bf16 %v1886_v51 }
 0x1fa   : > { %v1402_v46 = vunpack.i.l.bf16 %v1886_v51  ;;  %v1377_v52 = vunpack.i.l.bf16 %v1871_v40  ;;  %v1469_v51 = vpack.i.bf16 %v528_v47, %v1942_v27  ;;  %v529_v40 = vsel %vm505_vm6, %v1368_v49, 0.0 }
 0x1fb   : > { %v570_v62 = vsel %vm505_vm6, %v1408_v53, 0.0  ;;  %v554_v1 = vsel %vm505_vm6, %v1407_v54, %v1408_v53  ;;  %v566_v25 = vsel %vm505_vm6, 0.0, %v1407_v54  ;;  %v573_v53 = vsel %vm505_vm6, %v1403_v29, 0.0 }
 0x1fc   : > { %v1411_v0 = vpop.permute.xlu1 %1410  ;;  %v1902_v7 = vpack.i.bf16 %v570_v62, %v554_v1  ;;  %v557_v54 = vsel %vm505_vm6, %v1402_v46, %v1403_v29  ;;  %v600_v57 = vsel %vm505_vm6, %v1377_v52, %v1378_v50  ;;  %v569_v60 = vsel %vm505_vm6, 0.0, %v1402_v46 }
 0x1fd   : > { %v1413_v5 = vunpack.i.h.bf16 %v1411_v0  ;;  %v1412_v6 = vunpack.i.l.bf16 %v1411_v0  ;;  %v1494_v56 = vpack.i.bf16 %v573_v53, %v557_v54  ;;  %v1474_v59 = vpack.i.bf16 %v616_v55, %v600_v57 }
 0x1fe   : > { %1415 = vrot.lane.b32.xlu1 %v1902_v7, %s1687_s12  ;;  %v1499_v61 = vpack.i.bf16 %v529_v40, %v1900_v3  ;;  %v1388_v62 = vunpack.i.h.bf16 %v1881_v45  ;;  %v568_v31 = vsel %vm505_vm6, 0.0, %v1397_v58  ;;  %v1484_v45 = vpack.i.bf16 %v1867_v36, %v1864_v34 }
 0x1ff   : > { %v571_v13 = vsel %vm505_vm6, %v1413_v5, 0.0  ;;  %v555_v14 = vsel %vm505_vm6, %v1412_v6, %v1413_v5  ;;  %v567_v17 = vsel %vm505_vm6, 0.0, %v1412_v6  ;;  %v1479_v49 = vpack.i.bf16 %v569_v60, %v568_v31  ;;  %v2021_v6 = vld [vmem:[%s2298_s5] sm:$0xff] }
 0x200   : > { %v1918_v18 = vpack.i.bf16 %v571_v13, %v555_v14  ;;  %v1944_v32 = vpack.i.bf16 %v567_v17, %v566_v25  ;;  %v617_v0 = vsel %vm505_vm6, %v1388_v62, 0.0  ;;  %v601_v1 = vsel %vm505_vm6, %v1387_v63, %v1388_v62 }
 0x201   : > { %v1514_v5 = vpack.i.bf16 %v617_v0, %v601_v1  ;;  %v612_v48 = vsel %vm505_vm6, 0.0, %v1377_v52  ;;  %v1272_v8 = vcombine.high %v2021_v6, %v2021_v6  ;;  %v429_v63 = vand.u32 255, %v1788_v30 }
 0x202   : > { %1445 = vrot.lane.b32.xlu0 %v1918_v18, %s1687_s12  ;;  %1420 = vrot.lane.b32.xlu1 %v1921_v19, %s1688_s13  ;;  %v1489_v58 = vpack.i.bf16 %v613_v4, %v612_v48 }
 0x203   : > { %1110 = vmatprep.mubr.bf16.mxu1 %v1272_v8  ;;  %vm2067_vm9 = vcmp.ge.s32.totalorder %v429_v63, 16 }
 0x204   : > { %vm2086_vm11 = vmpackc.low %vm2067_vm9, %vm2067_vm9 }
 0x206   : > { %1450 = vrot.lane.b32.xlu0 %v1449_v37, %s1688_s13  ;;  %1425 = vrot.lane.b32.xlu1 %v1935_v26, %s1689_s14 }
 0x20a   : > { %1455 = vrot.lane.b32.xlu0 %v1929_v23, %s1689_s14  ;;  %1430 = vrot.lane.b32.xlu1 %v1944_v32, %s1687_s12 }
 0x20e   : > { %1460 = vrot.lane.b32.xlu0 %v1927_v22, %s1687_s12  ;;  %1435 = vrot.lane.b32.xlu1 %v1434_v28, %s1688_s13 }
 0x212   : > { %1465 = vrot.lane.b32.xlu0 %v1927_v22, %s1690_s15  ;;  %1440 = vrot.lane.b32.xlu1 %v1946_v33, %s1689_s14 }
 0x216   : > { %1470 = vrot.lane.b32.xlu0 %v1469_v51, %s1688_s13  ;;  %1495 = vrot.lane.b32.xlu1 %v1494_v56, %s1687_s12 }
 0x21a   : > { %1475 = vrot.lane.b32.xlu0 %v1474_v59, %s1689_s14  ;;  %1500 = vrot.lane.b32.xlu1 %v1499_v61, %s1688_s13 }
 0x21e   : > { %1480 = vrot.lane.b32.xlu0 %v1479_v49, %s1687_s12  ;;  %1505 = vrot.lane.b32.xlu1 %v1494_v56, %s1690_s15 }
 0x222   : > { %1485 = vrot.lane.b32.xlu0 %v1484_v45, %s1688_s13  ;;  %1515 = vrot.lane.b32.xlu1 %v1514_v5, %s1689_s14 }
 0x226   : > { %1490 = vrot.lane.b32.xlu0 %v1489_v58, %s1689_s14  ;;  %1520 = vrot.lane.b32.xlu1 %v1902_v7, %s1690_s15 }
 0x22a   : > { %1510 = vrot.lane.b32.xlu0 %v1479_v49, %s1690_s15  ;;  %1530 = vrot.lane.b32.xlu1 %v1944_v32, %s1690_s15 }
 0x22e   : > { %1525 = vrot.lane.b32.xlu0 %v1918_v18, %s1690_s15  ;;  %1545 = vrot.lane.b32.xlu1 %v1921_v19, %s1691_s16 }
 0x232   : > { %1535 = vrot.lane.b32.xlu0 %v1469_v51, %s1691_s16  ;;  %1555 = vrot.lane.b32.xlu1 %v1434_v28, %s1691_s16 }
 0x236   : > { %1540 = vrot.lane.b32.xlu0 %v1484_v45, %s1691_s16  ;;  %1570 = vrot.lane.b32.xlu1 %v1935_v26, %s1692_s17 }
 0x23a   : > { %1550 = vrot.lane.b32.xlu0 %v1449_v37, %s1691_s16  ;;  %1580 = vrot.lane.b32.xlu1 %v1946_v33, %s1692_s17 }
 0x23e   : > { %1560 = vrot.lane.b32.xlu0 %v1474_v59, %s1692_s17  ;;  %1595 = vrot.lane.b32.xlu1 %v1494_v56, %s1693_s18 }
 0x242   : > { %1565 = vrot.lane.b32.xlu0 %v1489_v58, %s1692_s17  ;;  %1605 = vrot.lane.b32.xlu1 %v1499_v61, %s1691_s16 }
 0x246   : > { %1575 = vrot.lane.b32.xlu0 %v1929_v23, %s1692_s17  ;;  %1610 = vrot.lane.b32.xlu1 %v1479_v49, %s1693_s18 }
 0x24a   : > { %1585 = vrot.lane.b32.xlu0 %v1474_v59, %s1694_s20  ;;  %1620 = vrot.lane.b32.xlu1 %v1514_v5, %s1692_s17 }
 0x24e   : > { %1590 = vrot.lane.b32.xlu0 %v1927_v22, %s1693_s18  ;;  %1625 = vrot.lane.b32.xlu1 %v1929_v23, %s1694_s20 }
 0x252   : > { %1600 = vrot.lane.b32.xlu0 %v1489_v58, %s1694_s20  ;;  %1635 = vrot.lane.b32.xlu1 %v1514_v5, %s1694_s20 }
 0x256   : > { %1615 = vrot.lane.b32.xlu0 %v1935_v26, %s1694_s20  ;;  %1640 = vrot.lane.b32.xlu1 %v1918_v18, %s1693_s18 }
 0x25a   : > { %1630 = vrot.lane.b32.xlu0 %v1902_v7, %s1693_s18  ;;  %1650 = vrot.lane.b32.xlu1 %v1944_v32, %s1693_s18 }
 0x25e   : > { %1645 = vrot.lane.b32.xlu0 %v1946_v33, %s1694_s20 }
 0x270   : > { %v2029_v9 = vpop.permute.xlu1 %1415 }
 0x274   : > { %v2031_v10 = vpop.permute.xlu0 %1445  ;;  %v1421_v11 = vpop.permute.xlu1 %1420 }
 0x275   : > { %v1423_v52 = vunpack.i.h.bf16 %v1421_v11  ;;  %v1422_v53 = vunpack.i.l.bf16 %v1421_v11  ;;  %v1448_v63 = vunpack.i.h.bf16 %v2031_v10 }
 0x277   : > { %v929_v62 = vsel %vm927_vm7, %v1422_v53, %v1423_v52 }
 0x278   : > { %v1451_v12 = vpop.permute.xlu0 %1450  ;;  %v2033_v13 = vpop.permute.xlu1 %1425 }
 0x279   : > { %v1453_v33 = vunpack.i.h.bf16 %v1451_v12  ;;  %v1452_v37 = vunpack.i.l.bf16 %v1451_v12 }
 0x27b   : > { %v931_v51 = vsel %vm927_vm7, %v1452_v37, %v1453_v33 }
 0x27c   : > { %v2035_v14 = vpop.permute.xlu0 %1455  ;;  %v2037_v15 = vpop.permute.xlu1 %1430  ;;  %v1039_v1 = vpack.c.bf16 %v931_v51, %v929_v62 }
 0x27d   : > { %v1458_v31 = vunpack.i.h.bf16 %v2035_v14  ;;  %v1457_v45 = vunpack.i.l.bf16 %v2035_v14 }
 0x27f   : > { %v723_v33 = vsel %vm719_vm8, %v1457_v45, %v1458_v31  ;;  %v1447_v31 = vunpack.i.l.bf16 %v2031_v10 }
 0x280   : > { %v2039_v16 = vpop.permute.xlu0 %1460  ;;  %v1436_v17 = vpop.permute.xlu1 %1435 }
 0x281   : > { %v1438_v55 = vunpack.i.h.bf16 %v1436_v17  ;;  %v1437_v56 = vunpack.i.l.bf16 %v1436_v17  ;;  %v1463_v51 = vunpack.i.h.bf16 %v2039_v16 }
 0x283   : > { %v928_v17 = vsel %vm927_vm7, %v1437_v56, %v1422_v53  ;;  %v930_v30 = vsel %vm927_vm7, %v1438_v55, %v1452_v37  ;;  %v1462_v55 = vunpack.i.l.bf16 %v2039_v16 }
 0x284   : > { %v2041_v7 = vpop.permute.xlu0 %1465  ;;  %v2043_v18 = vpop.permute.xlu1 %1440 }
 0x285   : > { %v1442_v37 = vunpack.i.l.bf16 %v2043_v18 }
 0x288   : > { %v1471_v19 = vpop.permute.xlu0 %1470  ;;  %v2045_v20 = vpop.permute.xlu1 %1495 }
 0x289   : > { %v1473_v22 = vunpack.i.h.bf16 %v1471_v19  ;;  %v1472_v23 = vunpack.i.l.bf16 %v1471_v19  ;;  %v1498_v52 = vunpack.i.h.bf16 %v2045_v20  ;;  %v1497_v53 = vunpack.i.l.bf16 %v2045_v20 }
 0x28b   : > { %v933_v29 = vsel %vm927_vm7, %v1472_v23, %v1473_v22  ;;  %v1428_v22 = vunpack.i.h.bf16 %v2033_v13  ;;  %v670_v16 = vsel %vm662_vm10, %v1497_v53, %v1498_v52 }
 0x28c   : > { %v1476_v24 = vpop.permute.xlu0 %1475  ;;  %v1501_v25 = vpop.permute.xlu1 %1500 }
 0x28d   : > { %v1503_v26 = vunpack.i.h.bf16 %v1501_v25  ;;  %v1502_v32 = vunpack.i.l.bf16 %v1501_v25  ;;  %v1478_v4 = vunpack.i.h.bf16 %v1476_v24  ;;  %v1477_v5 = vunpack.i.l.bf16 %v1476_v24 }
 0x28e   : > { %v1443_v24 = vunpack.i.h.bf16 %v2043_v18 }
 0x28f   : > { %v935_v46 = vsel %vm927_vm7, %v1502_v32, %v1503_v26  ;;  %v1038_v26 = vpack.c.bf16 %v930_v30, %v928_v17 }
 0x290   : > { %v2047_v28 = vpop.permute.xlu0 %1480  ;;  %v2051_v47 = vpop.permute.xlu1 %1505  ;;  %v1041_v50 = vpack.c.bf16 %v935_v46, %v933_v29 }
 0x292   : > { %1078 = vmatprep.subr.bf16.mxu1 %v1041_v50 }
 0x294   : > { %v1486_v54 = vpop.permute.xlu0 %1485  ;;  %v1516_v59 = vpop.permute.xlu1 %1515 }
 0x295   : > { %v1488_v57 = vunpack.i.h.bf16 %v1486_v54  ;;  %v1487_v40 = vunpack.i.l.bf16 %v1486_v54  ;;  %v1518_v60 = vunpack.i.h.bf16 %v1516_v59  ;;  %v1517_v61 = vunpack.i.l.bf16 %v1516_v59 }
 0x297   : > { %v932_v49 = vsel %vm927_vm7, %v1487_v40, %v1472_v23  ;;  %v934_v0 = vsel %vm927_vm7, %v1488_v57, %v1502_v32  ;;  %v727_v19 = vsel %vm719_vm8, %v1517_v61, %v1518_v60  ;;  %v1427_v23 = vunpack.i.l.bf16 %v2033_v13 }
 0x298   : > { %v1491_v48 = vpop.permute.xlu0 %1490  ;;  %v1040_v58 = vpack.c.bf16 %v934_v0, %v932_v49  ;;  %v2060_v12 = vpop.permute.xlu1 %1520  ;;  %v725_v32 = vsel %vm719_vm8, %v1477_v5, %v1478_v4  ;;  %v722_v40 = vsel %vm719_vm8, %v1443_v24, %v1457_v45  ;;  %v1483_v60 = vunpack.i.h.bf16 %v2047_v28 }
 0x299   : > { %v1493_v8 = vunpack.i.h.bf16 %v1491_v48  ;;  %v1492_v11 = vunpack.i.l.bf16 %v1491_v48  ;;  %v1037_v50 = vpack.c.bf16 %v727_v19, %v725_v32  ;;  %v721_v18 = vsel %vm719_vm8, %v1427_v23, %v1428_v22 }
 0x29a   : > { %1079 = vmatpush1.bf16.msra.mxu1 %v1040_v58  ;;  %v1035_v20 = vpack.c.bf16 %v723_v33, %v721_v18  ;;  %v720_v59 = vsel %vm719_vm8, %v1442_v37, %v1427_v23  ;;  %v1418_v49 = vunpack.i.h.bf16 %v2029_v9  ;;  %v1417_v0 = vunpack.i.l.bf16 %v2029_v9 }
 0x29b   : > { %1080 = vmatprep.subr.bf16.mxu1 %v1039_v1  ;;  %v724_v29 = vsel %vm719_vm8, %v1492_v11, %v1477_v5  ;;  %v726_v13 = vsel %vm719_vm8, %v1493_v8, %v1517_v61  ;;  %v1482_v61 = vunpack.i.l.bf16 %v2047_v28  ;;  %v1433_v1 = vunpack.i.h.bf16 %v2037_v15 }
 0x29c   : > { %v2072_v25 = vpop.permute.xlu0 %1510  ;;  %v2079_v46 = vpop.permute.xlu1 %1530  ;;  %v1275_v56 = vpack.c.bf16 %v726_v13, %v724_v29  ;;  %v1278_v45 = vpack.c.bf16 %v722_v40, %v720_v59  ;;  %v668_v4 = vsel %vm662_vm10, %v1462_v55, %v1463_v51  ;;  %v1432_v5 = vunpack.i.l.bf16 %v2037_v15 }
 0x29d   : > { %v667_v10 = vsel %vm662_vm10, %v1482_v61, %v1462_v55  ;;  %v669_v48 = vsel %vm662_vm10, %v1483_v60, %v1497_v53  ;;  %v1033_v8 = vpack.c.bf16 %v670_v16, %v668_v4  ;;  %v666_v9 = vsel %vm662_vm10, %v1447_v31, %v1448_v63 }
 0x29e   : > { %1081 = vmatpush1.bf16.msra.mxu1 %v1038_v26  ;;  %v1281_v11 = vpack.c.bf16 %v669_v48, %v667_v10  ;;  %v664_v30 = vsel %vm662_vm10, %v1417_v0, %v1418_v49  ;;  %v665_v15 = vsel %vm662_vm10, %v1433_v1, %v1447_v31  ;;  %v663_v19 = vsel %vm662_vm10, %v1432_v5, %v1417_v0 }
 0x29f   : > { %1082 = vmatprep.subr.bf16.mxu1 %v1037_v50  ;;  %v1031_v23 = vpack.c.bf16 %v666_v9, %v664_v30  ;;  %v1284_v14 = vpack.c.bf16 %v665_v15, %v663_v19  ;;  %v436_v32 = vand.u32 255, %v1791_v35  ;;  %v1508_v33 = vunpack.i.h.bf16 %v2051_v47 }
 0x2a0   : > { %v2093_v57 = vpop.permute.xlu0 %1525  ;;  %v2099_v62 = vpop.permute.xlu1 %1545  ;;  %v1507_v37 = vunpack.i.l.bf16 %v2051_v47  ;;  %v1468_v29 = vunpack.i.h.bf16 %v2041_v7  ;;  %v1467_v13 = vunpack.i.l.bf16 %v2041_v7  ;;  %v1513_v35 = vunpack.i.h.bf16 %v2072_v25 }
 0x2a1   : > { %v1512_v52 = vunpack.i.l.bf16 %v2072_v25  ;;  %vm480_vm13 = vcmp.lt.s32.totalorder %v436_v32, 240  ;;  %v1528_v18 = vunpack.i.h.bf16 %v2093_v57  ;;  %v1527_v3 = vunpack.i.l.bf16 %v2093_v57 }
 0x2a2   : > { %1276 = vmatpush1.bf16.msk.msra.mxu1 %vm2086_vm11, %v1275_v56  ;;  %v837_v47 = vsel %vm829_vm12, %v1507_v37, %v1508_v33  ;;  %v835_v27 = vsel %vm829_vm12, %v1467_v13, %v1468_v29  ;;  %v1522_v7 = vunpack.i.l.bf16 %v2060_v12  ;;  %vm2165_vm14 = vmpackc.low %vm480_vm13, %vm480_vm13  ;;  %v836_v55 = vsel %vm829_vm12, %v1513_v35, %v1507_v37 }
 0x2a3   : > { %1084 = vmatprep.subr.bf16.mxu1 %v1035_v20  ;;  %v1293_v34 = vpack.c.bf16 %v837_v47, %v835_v27  ;;  %v833_v2 = vsel %vm829_vm12, %v1527_v3, %v1528_v18  ;;  %v1532_v56 = vunpack.i.l.bf16 %v2079_v46  ;;  %v1548_v31 = vunpack.i.h.bf16 %v2099_v62 }
 0x2a4   : > { %v2109_v28 = vpop.permute.xlu0 %1535  ;;  %v2115_v58 = vpop.permute.xlu1 %1555  ;;  %v1547_v16 = vunpack.i.l.bf16 %v2099_v62 }
 0x2a5   : > { %v1538_v20 = vunpack.i.h.bf16 %v2109_v28  ;;  %v1537_v40 = vunpack.i.l.bf16 %v2109_v28  ;;  %v830_v0 = vsel %vm829_vm12, %v1532_v56, %v1522_v7  ;;  %v1557_v28 = vunpack.i.l.bf16 %v2115_v58 }
 0x2a6   : > { %1279 = vmatpush1.bf16.msk.msra.mxu1 %vm2086_vm11, %v1278_v45  ;;  %v1558_v45 = vunpack.i.h.bf16 %v2115_v58 }
 0x2a7   : > { %1086 = vmatprep.subr.bf16.mxu1 %v1033_v8  ;;  %v786_v1 = vsel %vm780_vm15, %v1537_v40, %v1538_v20 }
 0x2a8   : > { %v2120_v17 = vpop.permute.xlu0 %1540  ;;  %v2125_v22 = vpop.permute.xlu1 %1570 }
 0x2a9   : > { %v1543_v49 = vunpack.i.h.bf16 %v2120_v17  ;;  %v1573_v10 = vunpack.i.h.bf16 %v2125_v22  ;;  %v1572_v48 = vunpack.i.l.bf16 %v2125_v22 }
 0x2aa   : > { %1282 = vmatpush1.bf16.msk.msra.mxu1 %vm2086_vm11, %v1281_v11 }
 0x2ab   : > { %1088 = vmatprep.subr.bf16.mxu1 %v1031_v23  ;;  %v1011_v47 = vsel %vm1009_vm0, %v1572_v48, %v1573_v10 }
 0x2ac   : > { %v2129_v24 = vpop.permute.xlu0 %1550  ;;  %v2131_v26 = vpop.permute.xlu1 %1580 }
 0x2ad   : > { %v1553_v54 = vunpack.i.h.bf16 %v2129_v24  ;;  %v1552_v61 = vunpack.i.l.bf16 %v2129_v24  ;;  %v782_v24 = vsel %vm780_vm15, %v1547_v16, %v1548_v31  ;;  %v1583_v35 = vunpack.i.h.bf16 %v2131_v26 }
 0x2ae   : > { %1285 = vmatpush1.bf16.msk.msra.mxu1 %vm2086_vm11, %v1284_v14  ;;  %v1582_v18 = vunpack.i.l.bf16 %v2131_v26 }
 0x2af   : > { %1090 = vmatprep.subr.bf16.mxu1 %v1029_v39  ;;  %v1523_v39 = vunpack.i.h.bf16 %v2060_v12  ;;  %v1533_v12 = vunpack.i.h.bf16 %v2079_v46  ;;  %v1542_v46 = vunpack.i.l.bf16 %v2120_v17  ;;  %v784_v11 = vsel %vm780_vm15, %v1552_v61, %v1553_v54 }
 0x2b0   : > { %v2143_v50 = vpop.permute.xlu0 %1560  ;;  %v2147_v53 = vpop.permute.xlu1 %1595  ;;  %v783_v14 = vsel %vm780_vm15, %v1558_v45, %v1552_v61 }
 0x2b1   : > { %v831_v57 = vsel %vm829_vm12, %v1522_v7, %v1523_v39  ;;  %v785_v15 = vsel %vm780_vm15, %v1542_v46, %v1537_v40  ;;  %v1563_v58 = vunpack.i.h.bf16 %v2143_v50  ;;  %v1562_v19 = vunpack.i.l.bf16 %v2143_v50 }
 0x2b2   : > { %1288 = vmatpush1.bf16.msk.msra.mxu1 %vm2086_vm11, %v1287_v38  ;;  %v834_v38 = vsel %vm829_vm12, %v1512_v52, %v1467_v13  ;;  %v1296_v42 = vpack.c.bf16 %v833_v2, %v831_v57  ;;  %v1302_v13 = vpack.c.bf16 %v784_v11, %v782_v24  ;;  %v781_v52 = vsel %vm780_vm15, %v1557_v28, %v1547_v16 }
 0x2b3   : > { %1092 = vmatprep.subr.bf16.mxu1 %v1027_v41  ;;  %v1056_v60 = vpack.c.bf16 %v836_v55, %v834_v38  ;;  %v1050_v27 = vpack.c.bf16 %v783_v14, %v781_v52  ;;  %v1597_v7 = vunpack.i.l.bf16 %v2147_v53 }
 0x2b4   : > { %v2163_v25 = vpop.permute.xlu0 %1565  ;;  %v1606_v36 = vpop.permute.xlu1 %1605 }
 0x2b5   : > { %v1608_v21 = vunpack.i.h.bf16 %v1606_v36  ;;  %v1607_v41 = vunpack.i.l.bf16 %v1606_v36  ;;  %v1567_v23 = vunpack.i.l.bf16 %v2163_v25  ;;  %v1015_v36 = vsel %vm1009_vm0, %v1562_v19, %v1563_v58 }
 0x2b6   : > { %1291 = vmatpush1.bf16.msk.msra.mxu1 %vm2086_vm11, %v1290_v44  ;;  %v832_v44 = vsel %vm829_vm12, %v1533_v12, %v1527_v3  ;;  %v1598_v3 = vunpack.i.h.bf16 %v2147_v53 }
 0x2b7   : > { %1294 = vmatprep.subr.msk.bf16.mxu1 %vm2165_vm14, %v1293_v34  ;;  %v788_v63 = vsel %vm780_vm15, %v1607_v41, %v1608_v21  ;;  %v1054_v5 = vpack.c.bf16 %v832_v44, %v830_v0  ;;  %v787_v9 = vsel %vm780_vm15, %v1543_v49, %v1607_v41  ;;  %v1568_v34 = vunpack.i.h.bf16 %v2163_v25 }
 0x2b8   : > { %v2184_v59 = vpop.permute.xlu0 %1575  ;;  %v2186_v43 = vpop.permute.xlu1 %1610  ;;  %v1299_v62 = vpack.c.bf16 %v788_v63, %v786_v1  ;;  %v1052_v29 = vpack.c.bf16 %v787_v9, %v785_v15  ;;  %v1014_v38 = vsel %vm1009_vm0, %v1567_v23, %v1562_v19  ;;  %v976_v22 = vsel %vm968_vm2, %v1597_v7, %v1598_v3 }
 0x2b9   : > { %v1578_v32 = vunpack.i.h.bf16 %v2184_v59  ;;  %v1577_v33 = vunpack.i.l.bf16 %v2184_v59  ;;  %v1612_v10 = vunpack.i.l.bf16 %v2186_v43 }
 0x2ba   : > { %1095 = vmatpush2.bf16.msra.mxu1 %v1056_v60 }
 0x2bb   : > { %1297 = vmatprep.subr.msk.bf16.mxu1 %vm2165_vm14, %v1296_v42  ;;  %v1013_v21 = vsel %vm1009_vm0, %v1577_v33, %v1578_v32  ;;  %v1012_v41 = vsel %vm1009_vm0, %v1583_v35, %v1577_v33 }
 0x2bc   : > { %v1586_v4 = vpop.permute.xlu0 %1585  ;;  %v1621_v8 = vpop.permute.xlu1 %1620  ;;  %v1047_v54 = vpack.c.bf16 %v1013_v21, %v1011_v47 }
 0x2bd   : > { %v1623_v17 = vunpack.i.h.bf16 %v1621_v8  ;;  %v1622_v30 = vunpack.i.l.bf16 %v1621_v8  ;;  %v1588_v55 = vunpack.i.h.bf16 %v1586_v4  ;;  %v1587_v2 = vunpack.i.l.bf16 %v1586_v4 }
 0x2be   : > { %1097 = vmatpush2.bf16.msra.mxu1 %v1054_v5  ;;  %v1613_v5 = vunpack.i.h.bf16 %v2186_v43 }
 0x2bf   : > { %1300 = vmatprep.subr.msk.bf16.mxu1 %vm2165_vm14, %v1299_v62  ;;  %v1017_v39 = vsel %vm1009_vm0, %v1622_v30, %v1623_v17  ;;  %v1016_v25 = vsel %vm1009_vm0, %v1568_v34, %v1622_v30  ;;  %v884_v61 = vsel %vm878_vm1, %v1587_v2, %v1588_v55  ;;  %v1010_v62 = vsel %vm1009_vm0, %v1582_v18, %v1572_v48 }
 0x2c0   : > { %v2216_v37 = vpop.permute.xlu0 %1590  ;;  %v2219_v50 = vpop.permute.xlu1 %1625  ;;  %v1049_v53 = vpack.c.bf16 %v1017_v39, %v1015_v36  ;;  %v1048_v49 = vpack.c.bf16 %v1016_v25, %v1014_v38  ;;  %v1046_v58 = vpack.c.bf16 %v1012_v41, %v1010_v62  ;;  %v1271_v36 = vcombine.low %v2021_v6, %v2021_v6  ;;  %v1659_v38 = vld [vmem:[%s2298_s5 + $0x8] ss:$0 sps:$4 sm:$0xff]  }
 0x2c1   : > { %v1593_v20 = vunpack.i.h.bf16 %v2216_v37  ;;  %v1592_v40 = vunpack.i.l.bf16 %v2216_v37  ;;  %v1628_v42 = vunpack.i.h.bf16 %v2219_v50  ;;  %v1627_v44 = vunpack.i.l.bf16 %v2219_v50 }
 0x2c2   : > { %1099 = vmatpush2.bf16.msra.mxu1 %v1052_v29  ;;  %v975_v37 = vsel %vm968_vm2, %v1613_v5, %v1597_v7 }
 0x2c3   : > { %1303 = vmatprep.subr.msk.bf16.mxu1 %vm2165_vm14, %v1302_v13  ;;  %v974_v8 = vsel %vm968_vm2, %v1592_v40, %v1593_v20  ;;  %v882_v9 = vsel %vm878_vm1, %v1627_v44, %v1628_v42  ;;  %v973_v24 = vsel %vm968_vm2, %v1612_v10, %v1592_v40 }
 0x2c4   : > { %v1601_v26 = vpop.permute.xlu0 %1600  ;;  %v1636_v57 = vpop.permute.xlu1 %1635  ;;  %v1045_v14 = vpack.c.bf16 %v976_v22, %v974_v8  ;;  %v1044_v50 = vpack.c.bf16 %v975_v37, %v973_v24 }
 0x2c5   : > { %v1603_v12 = vunpack.i.h.bf16 %v1601_v26  ;;  %v1602_v56 = vunpack.i.l.bf16 %v1601_v26  ;;  %v1638_v59 = vunpack.i.h.bf16 %v1636_v57  ;;  %v1637_v60 = vunpack.i.l.bf16 %v1636_v57 }
 0x2c6   : > { %1101 = vmatpush2.bf16.msra.mxu1 %v1050_v27 }
 0x2c7   : > { %v883_v46 = vsel %vm878_vm1, %v1602_v56, %v1587_v2  ;;  %1102 = vmatprep.subr.bf16.mxu1 %v1049_v53  ;;  %v885_v63 = vsel %vm878_vm1, %v1603_v12, %v1637_v60  ;;  %v886_v31 = vsel %vm878_vm1, %v1637_v60, %v1638_v59 }
 0x2c8   : > { %v1616_v16 = vpop.permute.xlu0 %1615  ;;  %v1060_v0 = vpack.c.bf16 %v885_v63, %v883_v46  ;;  %v1305_v1 = vpack.c.bf16 %v886_v31, %v884_v61  ;;  %v1641_v4 = vpop.permute.xlu1 %1640 }
 0x2c9   : > { %v1618_v45 = vunpack.i.h.bf16 %v1616_v16  ;;  %v1617_v28 = vunpack.i.l.bf16 %v1616_v16  ;;  %v1643_v17 = vunpack.i.h.bf16 %v1641_v4  ;;  %v1642_v30 = vunpack.i.l.bf16 %v1641_v4 }
 0x2ca   : > { %1103 = vmatpush2.bf16.msra.mxu1 %v1048_v49  ;;  %1306 = vmatprep.subr.msk.bf16.mxu0 %vm2165_vm14, %v1305_v1 }
 0x2cb   : > { %v880_v11 = vsel %vm878_vm1, %v1617_v28, %v1618_v45  ;;  %1104 = vmatprep.subr.bf16.mxu1 %v1047_v54  ;;  %1132 = vmatpush1.bf16.msra.mxu0 %v1060_v0  ;;  %v972_v13 = vsel %vm968_vm2, %v1642_v30, %v1643_v17 }
 0x2cc   : > { %v1308_v15 = vpack.c.bf16 %v882_v9, %v880_v11  ;;  %v1631_v43 = vpop.permute.xlu0 %1630  ;;  %v1651_v23 = vpop.permute.xlu1 %1650 }
 0x2cd   : > { %v1633_v19 = vunpack.i.h.bf16 %v1631_v43  ;;  %v1632_v48 = vunpack.i.l.bf16 %v1631_v43  ;;  %v1653_v32 = vunpack.i.h.bf16 %v1651_v23  ;;  %v1652_v33 = vunpack.i.l.bf16 %v1651_v23 }
 0x2ce   : > { %1105 = vmatpush2.bf16.msra.mxu1 %v1046_v58  ;;  %1309 = vmatprep.subr.msk.bf16.mxu0 %vm2165_vm14, %v1308_v15 }
 0x2cf   : > { %1106 = vmatprep.subr.bf16.mxu1 %v1045_v14  ;;  %v970_v29 = vsel %vm968_vm2, %v1632_v48, %v1633_v19  ;;  %v969_v3 = vsel %vm968_vm2, %v1652_v33, %v1632_v48  ;;  %v971_v27 = vsel %vm968_vm2, %v1653_v32, %v1642_v30 }
 0x2d0   : > { %v1646_v35 = vpop.permute.xlu0 %1645  ;;  %v1043_v52 = vpack.c.bf16 %v972_v13, %v970_v29  ;;  %v1042_v34 = vpack.c.bf16 %v971_v27, %v969_v3 }
 0x2d1   : > { %v1648_v47 = vunpack.i.h.bf16 %v1646_v35  ;;  %v1647_v18 = vunpack.i.l.bf16 %v1646_v35 }
 0x2d2   : > { %1107 = vmatpush2.bf16.msra.mxu1 %v1044_v50 }
 0x2d3   : > { %v879_v51 = vsel %vm878_vm1, %v1647_v18, %v1617_v28  ;;  %v881_v39 = vsel %vm878_vm1, %v1648_v47, %v1627_v44  ;;  %1108 = vmatprep.subr.bf16.mxu1 %v1043_v52 }
 0x2d4   : > { %v1058_v7 = vpack.c.bf16 %v881_v39, %v879_v51 }
 0x2d6   : > { %1109 = vmatpush2.bf16.msra.mxu1 %v1042_v34  ;;  %1134 = vmatpush1.bf16.msra.mxu0 %v1058_v7 }
 0x2d9   : > { %1111 = vmatmul.mubr.bf16.vlgmr.msra.gmra.mxu1 %v1271_v36  ;;  %1310 = vmatmul.mubr.msk.bf16.vlgmr.msra.gmra.mxu0 %vm1074_vm3, %v1659_v38 }
 0x399   : > { %v1112_v55 = vpop.f32.mrf.mxu1  ;;  %v1153_v2 = vpop.f32.mrf.mxu0 }
 0x39a   : > { %v1154_v26 = vadd.f32 %v1153_v2, %v1112_v55 }
 0x39b   : > { %v1114_v21 = vpop.f32.mrf.mxu1  ;;  %v1155_v41 = vpop.f32.mrf.mxu0 }
 0x39c   : > { %v1167_v12 = vrot.slane %v1154_v26, 4  ;;  %v1156_v56 = vadd.f32 %v1155_v41, %v1114_v21  ;;  %1181 = sbr.rel (!%p1752_p4) target bundleno = 937 (0x3a9), region = 48 }
 0x39d   : > { %v1116_v57 = vpop.f32.mrf.mxu1  ;;  %v1157_v6 = vpop.f32.mrf.mxu0 }
 0x39e   : > { %1171 = vst [vmem:[%s1769_s19 + $0x10] ss:$-12 sps:$4 sm:$0xff] %v1167_v12   ;;  %v1168_v53 = vrot.slane %v1156_v56, 4 }
 0x39f   : > { %v1117_v25 = vpop.f32.mrf.mxu1  ;;  %v1158_v20 = vpop.f32.mrf.mxu0 }
 0x3a0   : > { %1172 = vst [vmem:[%s1769_s19 + $0x18] ss:$-12 sps:$4 sm:$0xff] %v1168_v53  }
 0x3a5   : > { %v1197_v40 = vld [vmem:[%s1769_s19] sm:$0xff]  ;;  %v1201_v60 = vld [vmem:[%s1769_s19 + $0x10] sm:$0xff] }
 0x3a6   : > { %1198 = vst [vmem:[%s1184_s9] sm:$0xff] %v1197_v40  ;;  %1202 = vst [vmem:[%s1184_s9 + $0x20] sm:$0xff] %v1201_v60 }
 0x3a7   : > { %v1199_v59 = vld [vmem:[%s1769_s19 + $0x8] sm:$0xff]  ;;  %v1203_v42 = vld [vmem:[%s1769_s19 + $0x18] sm:$0xff] }
 0x3a8   : > { %1200 = vst [vmem:[%s1184_s9 + $0x8] sm:$0xff] %v1199_v59  ;;  %1204 = vst [vmem:[%s1184_s9 + $0x28] sm:$0xff] %v1203_v42 }
 0x3a9 PF: > { %p13_p8 = scmp.ge.s32.totalorder %s1743_s25, 4   ;;  %s2315_s21 = smov %s1678_s22 }
 0x3aa   : > { %s2316_s22 = smov %s1750_s28  ;;  %s2317_s23 = smov %s1743_s25 }
 0x3ab   :  { %15 = sbr.rel (!%p13_p8) target bundleno = 2 (0x2), region = 97 }

</bundles_post_ra>
